<compile_context>
chip_gen: v7x
topology: tpu7x:2x2x1
jax: 0.10.0
libtpu: 0.0.40
codegen_flags: <defaults>
</compile_context>

<pallas_src>
import math

import jax
import jax.numpy as jnp
from jax.experimental import pallas as pl
from jax.experimental.pallas import tpu as pltpu


def qnet_kernel(s_ref, a_ref, w1s_ref, w1a_ref, b1_ref, w2_ref, b2_ref,
                w3_ref, b3_ref, out_ref):
    # Layer 1: split matmul replaces torch.cat([state, action], 1) @ W1.
    h1 = jnp.tanh(
        jnp.dot(s_ref[...], w1s_ref[...], preferred_element_type=jnp.float32)
        + jnp.dot(a_ref[...], w1a_ref[...], preferred_element_type=jnp.float32)
        + b1_ref[...]
    )
    # Layer 2 (cast activations to the weight dtype so bf16 weights hit the
    # bf16 MXU path; accumulation stays f32).
    h2 = jnp.tanh(
        jnp.dot(h1.astype(w2_ref.dtype), w2_ref[...],
                preferred_element_type=jnp.float32)
        + b2_ref[...]
    )
    # Layer 3 has a single output: VPU multiply + lane reduce (MXU stays free),
    # elementwise math kept in f32 (v5e has no bf16 VPU/EUP).
    out_ref[...] = (
        jnp.sum(h2 * w3_ref[...].astype(jnp.float32), axis=-1, keepdims=True)
        + b3_ref[0, 0]
    )


def qnetwork_forward(state, action, params, *, block_batch=256,
                     compute_dtype=jnp.float32):
    """Whole MLP in one pallas_call, batch-tiled, weights VMEM-resident."""
    w1, b1, w2, b2, w3, b3 = params
    B, state_dim = state.shape
    action_dim = action.shape[1]
    h1_dim = w1.shape[1]
    h2_dim = w2.shape[1]

    # Split W1 so the kernel never concatenates along the lane axis.
    w1_s = w1[:state_dim]
    w1_a = w1[state_dim:]
    # Final layer as a (1, hidden) row for the VPU mul + lane-reduce path.
    w3_row = w3.reshape(1, h2_dim)
    # b3 goes to SMEM as a scalar.
    b3_s = b3.reshape(1, 1).astype(jnp.float32)

    # Batch tile: big enough to amortize per-step overhead, multiple of 8.
    TB = min(block_batch, max(8, ((B + 7) // 8) * 8))
    B_pad = ((B + TB - 1) // TB) * TB
    if B_pad != B:
        state = jnp.pad(state, ((0, B_pad - B), (0, 0)))
        action = jnp.pad(action, ((0, B_pad - B), (0, 0)))

    if compute_dtype != jnp.float32:
        # bf16 activation/weight stream (v6e/v7x); biases + accumulation stay f32.
        state = state.astype(compute_dtype)
        action = action.astype(compute_dtype)
        w1_s = w1_s.astype(compute_dtype)
        w1_a = w1_a.astype(compute_dtype)
        w2 = w2.astype(compute_dtype)
        w3_row = w3_row.astype(compute_dtype)

    grid = (B_pad // TB,)
    resident = lambda i: (0, 0)  # weights/biases fixed block -> stay in VMEM
    batched = lambda i: (i, 0)

    flops = 2 * B_pad * (state_dim * h1_dim + action_dim * h1_dim
                         + h1_dim * h2_dim + h2_dim)
    transcendentals = B_pad * (h1_dim + h2_dim)
    bytes_accessed = int(
        state.size * state.dtype.itemsize
        + action.size * action.dtype.itemsize
        + (w1_s.size + w1_a.size + w2.size + w3_row.size) * w2.dtype.itemsize
        + (b1.size + b2.size + 1) * 4
        + B_pad * 4
    )

    out = pl.pallas_call(
        qnet_kernel,
        out_shape=jax.ShapeDtypeStruct((B_pad, 1), jnp.float32),
        grid=grid,
        in_specs=[
            pl.BlockSpec((TB, state_dim), batched),
            pl.BlockSpec((TB, action_dim), batched),
            pl.BlockSpec((state_dim, h1_dim), resident),
            pl.BlockSpec((action_dim, h1_dim), resident),
            pl.BlockSpec((1, h1_dim), resident),
            pl.BlockSpec((h1_dim, h2_dim), resident),
            pl.BlockSpec((1, h2_dim), resident),
            pl.BlockSpec((1, h2_dim), resident),
            pl.BlockSpec((1, 1), resident, memory_space=pltpu.MemorySpace.SMEM),
        ],
        out_specs=pl.BlockSpec((TB, 1), batched),
        compiler_params=pltpu.CompilerParams(
            dimension_semantics=("parallel",),
        ),
        cost_estimate=pl.CostEstimate(
            flops=flops,
            transcendentals=transcendentals,
            bytes_accessed=bytes_accessed,
        ),
    )(state, action, w1_s, w1_a, b1, w2, b2, w3_row, b3_s)

    return out[:B]


def init_params(key, input_dim, hidden_dim, init_w=0.003):
    """PyTorch-like init (uniform +/- 1/sqrt(fan_in); last layer +/- init_w).
    Weights stored as (in, out) so the kernel computes x @ W + b."""
    k1, k2, k3, k4, k5, k6 = jax.random.split(key, 6)

    def lin(kw, kb, fan_in, fan_out, bound):
        w = jax.random.uniform(kw, (fan_in, fan_out), jnp.float32, -bound, bound)
        b = jax.random.uniform(kb, (1, fan_out), jnp.float32, -bound, bound)
        return w, b

    w1, b1 = lin(k1, k2, input_dim, hidden_dim[0], 1.0 / math.sqrt(input_dim))
    w2, b2 = lin(k3, k4, hidden_dim[0], hidden_dim[1], 1.0 / math.sqrt(hidden_dim[0]))
    w3, b3 = lin(k5, k6, hidden_dim[1], 1, init_w)
    return (w1, b1, w2, b2, w3, b3)


if __name__ == "__main__":
    # Small shapes consistent with the module: state_dim + action_dim = input_dim.
    batch = 8
    state_dim, action_dim = 12, 4
    input_dim = state_dim + action_dim
    hidden_dim = [32, 32]

    key = jax.random.PRNGKey(0)
    k_s, k_a, k_p = jax.random.split(key, 3)
    state = jax.random.normal(k_s, (batch, state_dim), jnp.float32)
    action = jax.random.normal(k_a, (batch, action_dim), jnp.float32)
    params = init_params(k_p, input_dim, hidden_dim)

    q = qnetwork_forward(state, action, params)
    jax.block_until_ready(q)

    # Sanity check against plain-JAX reference of the same forward pass.
    w1, b1, w2, b2, w3, b3 = params
    x = jnp.concatenate([state, action], axis=1)
    ref = jnp.tanh(x @ w1 + b1)
    ref = jnp.tanh(ref @ w2 + b2)
    ref = ref @ w3 + b3
    assert q.shape == (batch, 1)
    assert jnp.allclose(q, ref, atol=1e-5, rtol=1e-5)

    # Also exercise a larger, non-trivially-tiled batch (grid > 1, padding path).
    big_B = 600
    kb_s, kb_a = jax.random.split(jax.random.PRNGKey(1))
    s_big = jax.random.normal(kb_s, (big_B, state_dim), jnp.float32)
    a_big = jax.random.normal(kb_a, (big_B, action_dim), jnp.float32)
    q_big = qnetwork_forward(s_big, a_big, params, block_batch=256)
    jax.block_until_ready(q_big)
    xb = jnp.concatenate([s_big, a_big], axis=1)
    rb = jnp.tanh(xb @ w1 + b1)
    rb = jnp.tanh(rb @ w2 + b2)
    rb = rb @ w3 + b3
    assert q_big.shape == (big_B, 1)
    assert jnp.allclose(q_big, rb, atol=1e-5, rtol=1e-5)

    print("KERNEL_OK")
</pallas_src>

<mosaic_0001>
module attributes {stable_mosaic.version = 11 : i64} {
  func.func @qnet_kernel(%arg0: i32, %arg1: memref<8x12xf32, #tpu.memory_space<vmem>>, %arg2: memref<8x4xf32, #tpu.memory_space<vmem>>, %arg3: memref<12x32xf32, #tpu.memory_space<vmem>>, %arg4: memref<4x32xf32, #tpu.memory_space<vmem>>, %arg5: memref<1x32xf32, #tpu.memory_space<vmem>>, %arg6: memref<32x32xf32, #tpu.memory_space<vmem>>, %arg7: memref<1x32xf32, #tpu.memory_space<vmem>>, %arg8: memref<1x32xf32, #tpu.memory_space<vmem>>, %arg9: memref<1x1xf32, #tpu.memory_space<smem>>, %arg10: memref<8x1xf32, #tpu.memory_space<vmem>>) attributes {dimension_semantics = [#tpu.dimension_semantics<parallel>], iteration_bounds = array<i64: 1>, scalar_prefetch = 0 : i64, scratch_operands = 0 : i64, tpu.core_type = #tpu.core_type<tc>, window_params = [{transform_indices = @transform_0, window_bounds = array<i64: 8, 12>}, {transform_indices = @transform_1, window_bounds = array<i64: 8, 4>}, {pipeline_mode = #tpu.pipeline_mode<synchronous>, transform_indices = @transform_2, window_bounds = array<i64: 12, 32>}, {pipeline_mode = #tpu.pipeline_mode<synchronous>, transform_indices = @transform_3, window_bounds = array<i64: 4, 32>}, {pipeline_mode = #tpu.pipeline_mode<synchronous>, transform_indices = @transform_4, window_bounds = array<i64: 1, 32>}, {pipeline_mode = #tpu.pipeline_mode<synchronous>, transform_indices = @transform_5, window_bounds = array<i64: 32, 32>}, {pipeline_mode = #tpu.pipeline_mode<synchronous>, transform_indices = @transform_6, window_bounds = array<i64: 1, 32>}, {pipeline_mode = #tpu.pipeline_mode<synchronous>, transform_indices = @transform_7, window_bounds = array<i64: 1, 32>}, {transform_indices = @transform_8, window_bounds = array<i64: 1, 1>}, {transform_indices = @transform_9, window_bounds = array<i64: 8, 1>}]} {
    %c0 = arith.constant 0 : index
    %c0_0 = arith.constant 0 : index
    %0 = vector.load %arg1[%c0, %c0_0] : memref<8x12xf32, #tpu.memory_space<vmem>>, vector<8x12xf32>
    %c0_1 = arith.constant 0 : index
    %c0_2 = arith.constant 0 : index
    %1 = vector.load %arg3[%c0_1, %c0_2] : memref<12x32xf32, #tpu.memory_space<vmem>>, vector<12x32xf32>
    %cst = arith.constant dense<0.000000e+00> : vector<8x32xf32>
    %2 = tpu.matmul %0, %1, %cst {dimension_numbers = #tpu.dot_dimension_numbers<[1], [0], [0], [1], [0, 0, 1, 1], [], []>} : vector<8x12xf32>, vector<12x32xf32>, vector<8x32xf32> -> vector<8x32xf32>
    %c0_3 = arith.constant 0 : index
    %c0_4 = arith.constant 0 : index
    %3 = vector.load %arg2[%c0_3, %c0_4] : memref<8x4xf32, #tpu.memory_space<vmem>>, vector<8x4xf32>
    %c0_5 = arith.constant 0 : index
    %c0_6 = arith.constant 0 : index
    %4 = vector.load %arg4[%c0_5, %c0_6] : memref<4x32xf32, #tpu.memory_space<vmem>>, vector<4x32xf32>
    %cst_7 = arith.constant dense<0.000000e+00> : vector<8x32xf32>
    %5 = tpu.matmul %3, %4, %cst_7 {dimension_numbers = #tpu.dot_dimension_numbers<[1], [0], [0], [1], [0, 0, 1, 1], [], []>} : vector<8x4xf32>, vector<4x32xf32>, vector<8x32xf32> -> vector<8x32xf32>
    %6 = arith.addf %2, %5 : vector<8x32xf32>
    %c0_8 = arith.constant 0 : index
    %c0_9 = arith.constant 0 : index
    %7 = vector.load %arg5[%c0_8, %c0_9] : memref<1x32xf32, #tpu.memory_space<vmem>>, vector<1x32xf32>
    %8 = vector.broadcast %7 : vector<1x32xf32> to vector<8x32xf32>
    %9 = arith.addf %6, %8 : vector<8x32xf32>
    %10 = math.tanh %9 : vector<8x32xf32>
    %c0_10 = arith.constant 0 : index
    %c0_11 = arith.constant 0 : index
    %11 = vector.load %arg6[%c0_10, %c0_11] : memref<32x32xf32, #tpu.memory_space<vmem>>, vector<32x32xf32>
    %cst_12 = arith.constant dense<0.000000e+00> : vector<8x32xf32>
    %12 = tpu.matmul %10, %11, %cst_12 {dimension_numbers = #tpu.dot_dimension_numbers<[1], [0], [0], [1], [0, 0, 1, 1], [], []>} : vector<8x32xf32>, vector<32x32xf32>, vector<8x32xf32> -> vector<8x32xf32>
    %c0_13 = arith.constant 0 : index
    %c0_14 = arith.constant 0 : index
    %13 = vector.load %arg7[%c0_13, %c0_14] : memref<1x32xf32, #tpu.memory_space<vmem>>, vector<1x32xf32>
    %14 = vector.broadcast %13 : vector<1x32xf32> to vector<8x32xf32>
    %15 = arith.addf %12, %14 : vector<8x32xf32>
    %16 = math.tanh %15 : vector<8x32xf32>
    %c0_15 = arith.constant 0 : index
    %c0_16 = arith.constant 0 : index
    %17 = vector.load %arg8[%c0_15, %c0_16] : memref<1x32xf32, #tpu.memory_space<vmem>>, vector<1x32xf32>
    %18 = vector.broadcast %17 : vector<1x32xf32> to vector<8x32xf32>
    %19 = arith.mulf %16, %18 : vector<8x32xf32>
    %cst_17 = arith.constant dense<0.000000e+00> : vector<8xf32>
    %20 = vector.multi_reduction <add>, %19, %cst_17 [1] : vector<8x32xf32> to vector<8xf32>
    %21 = vector.shape_cast %20 : vector<8xf32> to vector<8x1xf32>
    %c0_18 = arith.constant 0 : index
    %c0_19 = arith.constant 0 : index
    %22 = memref.load %arg9[%c0_18, %c0_19] : memref<1x1xf32, #tpu.memory_space<smem>>
    %23 = vector.broadcast %22 : f32 to vector<8x1xf32>
    %24 = arith.addf %21, %23 : vector<8x1xf32>
    %c0_20 = arith.constant 0 : index
    %c0_21 = arith.constant 0 : index
    %25 = vector.load %arg10[%c0_20, %c0_21] : memref<8x1xf32, #tpu.memory_space<vmem>>, vector<8x1xf32>
    tpu.vector_store %arg10[%c0_20, %c0_21], %24 {strides = array<i32>} : memref<8x1xf32, #tpu.memory_space<vmem>>, vector<8x1xf32>,
    return
  }
  func.func @transform_0(%arg0: i32) -> (i32, i32) {
    %c0_i32 = arith.constant 0 : i32
    %c0_i32_0 = arith.constant 0 : i32
    return %arg0, %c0_i32 : i32, i32
  }
  func.func @transform_1(%arg0: i32) -> (i32, i32) {
    %c0_i32 = arith.constant 0 : i32
    %c0_i32_0 = arith.constant 0 : i32
    return %arg0, %c0_i32 : i32, i32
  }
  func.func @transform_2(%arg0: i32) -> (i32, i32) {
    %c0_i32 = arith.constant 0 : i32
    %c0_i32_0 = arith.constant 0 : i32
    %c0_i32_1 = arith.constant 0 : i32
    return %c0_i32, %c0_i32_0 : i32, i32
  }
  func.func @transform_3(%arg0: i32) -> (i32, i32) {
    %c0_i32 = arith.constant 0 : i32
    %c0_i32_0 = arith.constant 0 : i32
    %c0_i32_1 = arith.constant 0 : i32
    return %c0_i32, %c0_i32_0 : i32, i32
  }
  func.func @transform_4(%arg0: i32) -> (i32, i32) {
    %c0_i32 = arith.constant 0 : i32
    %c0_i32_0 = arith.constant 0 : i32
    %c0_i32_1 = arith.constant 0 : i32
    return %c0_i32, %c0_i32_0 : i32, i32
  }
  func.func @transform_5(%arg0: i32) -> (i32, i32) {
    %c0_i32 = arith.constant 0 : i32
    %c0_i32_0 = arith.constant 0 : i32
    %c0_i32_1 = arith.constant 0 : i32
    return %c0_i32, %c0_i32_0 : i32, i32
  }
  func.func @transform_6(%arg0: i32) -> (i32, i32) {
    %c0_i32 = arith.constant 0 : i32
    %c0_i32_0 = arith.constant 0 : i32
    %c0_i32_1 = arith.constant 0 : i32
    return %c0_i32, %c0_i32_0 : i32, i32
  }
  func.func @transform_7(%arg0: i32) -> (i32, i32) {
    %c0_i32 = arith.constant 0 : i32
    %c0_i32_0 = arith.constant 0 : i32
    %c0_i32_1 = arith.constant 0 : i32
    return %c0_i32, %c0_i32_0 : i32, i32
  }
  func.func @transform_8(%arg0: i32) -> (i32, i32) {
    %c0_i32 = arith.constant 0 : i32
    %c0_i32_0 = arith.constant 0 : i32
    %c0_i32_1 = arith.constant 0 : i32
    return %c0_i32, %c0_i32_0 : i32, i32
  }
  func.func @transform_9(%arg0: i32) -> (i32, i32) {
    %c0_i32 = arith.constant 0 : i32
    %c0_i32_0 = arith.constant 0 : i32
    return %arg0, %c0_i32 : i32, i32
  }
}

</mosaic_0001>

<bundles_post_ra>
// kernel: tpu_custom_call.1
= control target key start
LH: loop header
LB: loop body
LE: loop exit
PB: predicated region body
PF: predicated region fallthrough
CT: control target
= control target key end

     0   :  { %15 = vsyncpa [#allocation4], 0  ;;  %s609_s0 = inlined_call_operand.hbm [shape: f32[8,12], index: 0, kind: input, shape index: {}]   ;;  %s610_s1 = inlined_call_operand.vmem [shape: f32[8,4], index: 1, kind: input, shape index: {}]   ;;  %s611_s2 = inlined_call_operand.hbm [shape: f32[12,32], index: 2, kind: input, shape index: {}]   ;;  %s612_s3 = inlined_call_operand.hbm [shape: f32[4,32], index: 3, kind: input, shape index: {}]   ;;  %s613_s4 = inlined_call_operand.vmem [shape: f32[1,32], index: 4, kind: input, shape index: {}]   ;;  %s614_s5 = inlined_call_operand.vmem [shape: f32[32,32], index: 5, kind: input, shape index: {}]   ;;  %s615_s6 = inlined_call_operand.vmem [shape: f32[1,32], index: 6, kind: input, shape index: {}]   ;;  %s616_s7 = inlined_call_operand.vmem [shape: f32[1,32], index: 7, kind: input, shape index: {}]   ;;  %s617_s8 = inlined_call_operand.<no memory space> [shape: f32[1,1], index: 8, kind: input, shape index: {}]   ;;  %s618_s9 = inlined_call_operand.vmem [shape: f32[8,1], index: 9, kind: output, shape index: {}]  }
   0x1   :  { %16 = vsyncpa [#allocation6], 0  ;;  %s481_s30 = smov [#allocation5]   ;;  %s411_s13 = scalar_lea.hbm %s611_s2, 256 }
   0x2   :  { %s34_s10 = sshll.u32 %s481_s30, 4  ;;  %p412_p0 = scmp.ne.s32.totalorder %s611_s2, %s411_s13  ;;  %s35_s10 = int_to_ptr.vmem [resolvable:$true] %s34_s10 }
   0x3   :  { %p415_p1 = scmp.lt.u32.totalorder %s411_s13, %s611_s2 }
   0x5   :  { %p417_p2 = pnand %p415_p1, %p412_p0 }
   0x7   :  { %420 = shalt.err (!%p417_p2)
}
   0x8   :  { %s421_s18 = scalar_lea.vmem %s35_s10, 256  ;;  %p426_p4 = scmp.lt.s32.totalorder %s35_s10, %s35_s10 }
   0x9   :  { %p422_p3 = scmp.ne.s32.totalorder %s35_s10, %s421_s18  ;;  %p427_p5 = scmp.lt.s32.totalorder %s421_s18, %s421_s18 }
   0xb   :  { %p428_p6 = por %p427_p5, %p426_p4 }
   0xd   :  { %p429_p7 = pnand %p428_p6, %p422_p3 }
   0xf   :  { %432 = shalt.err (!%p429_p7)
}
  0x10   :  { %s482_s19 = smov 128   ;;  %s483_s20 = smov 8  }
  0x11   :  { %40 = dma.hbm_to_vmem [thread:$0]  %s611_s2, 256, %s35_s10, [#allocation6], %s482_s19, %s482_s19, %s483_s20  }
  0x12   :  { %s484_s23 = smov [#allocation3]   ;;  %s485_s25 = smov [#allocation7]  }
  0x13   :  { %s23_s24 = sshll.u32 %s484_s23, 4  ;;  %s47_s26 = sshll.u32 %s485_s25, 4  ;;  %s24_s24 = int_to_ptr.vmem [resolvable:$true] %s23_s24  ;;  %s48_s26 = int_to_ptr.vmem [resolvable:$true] %s47_s26 }
  0x14   :  { %s433_s29 = scalar_lea.hbm %s609_s0, 128 }
  0x15   :  { %p434_p8 = scmp.ne.s32.totalorder %s609_s0, %s433_s29  ;;  %p437_p9 = scmp.lt.u32.totalorder %s433_s29, %s609_s0 }
  0x17   :  { %p439_p10 = pnand %p437_p9, %p434_p8 }
  0x19   :  { %442 = shalt.err (!%p439_p10)
}
  0x1a   :  { %s443_s2 = scalar_lea.vmem %s24_s24, 128  ;;  %p448_p12 = scmp.lt.s32.totalorder %s24_s24, %s24_s24 }
  0x1b   :  { %p444_p11 = scmp.ne.s32.totalorder %s24_s24, %s443_s2  ;;  %p449_p13 = scmp.lt.s32.totalorder %s443_s2, %s443_s2 }
  0x1d   :  { %p450_p0 = por %p449_p13, %p448_p12 }
  0x1f   :  { %p451_p1 = pnand %p450_p0, %p444_p11 }
  0x21   :  { %454 = shalt.err (!%p451_p1)
}
  0x22   :  { %26 = dma.hbm_to_vmem [thread:$0]  %s609_s0, 128, %s24_s24, [#allocation4]  }
  0x23   :  { %s455_s17 = scalar_lea.hbm %s612_s3, 64 }
  0x24   :  { %p456_p2 = scmp.ne.s32.totalorder %s612_s3, %s455_s17  ;;  %p459_p3 = scmp.lt.u32.totalorder %s455_s17, %s612_s3 }
  0x26   :  { %p461_p4 = pnand %p459_p3, %p456_p2 }
  0x28   :  { %464 = shalt.err (!%p461_p4)
}
  0x29   :  { %s465_s22 = scalar_lea.vmem %s48_s26, 64  ;;  %p470_p6 = scmp.lt.s32.totalorder %s48_s26, %s48_s26 }
  0x2a   :  { %p466_p5 = scmp.ne.s32.totalorder %s48_s26, %s465_s22  ;;  %p471_p7 = scmp.lt.s32.totalorder %s465_s22, %s465_s22 }
  0x2c   :  { %p472_p8 = por %p471_p7, %p470_p6 }
  0x2e   :  { %p473_p9 = pnand %p472_p8, %p466_p5 }
  0x30   :  { %476 = shalt.err (!%p473_p9)
}
  0x31   :  { %50 = dma.hbm_to_vmem [thread:$0]  %s612_s3, 64, %s48_s26, [#allocation6]  }
  0x32   :  { %477 = dma.done.wait [#allocation4], 128  }
  0x33   :  { %478 = vsyncadd [#allocation4], 4294967168 }
  0x34   :  { %479 = dma.done.wait [#allocation6], 320  }
  0x35   :  { %480 = vsyncadd [#allocation6], 4294966976  ;;  %v486_v0 = vmov 0.0   ;;  %vm487_vm0 = vmmov 0   ;;  %v488_v1 = vmov 0.0|0.0   ;;  %vm79_vm1 = vcmask 1043456  }
  0x36   :  { %365 = vmatprep.subr.mxu1 %v486_v0  ;;  %367 = vmatprep.mubr.msk.f32.mxu1 %vm487_vm0, %v486_v0  ;;  %vm75_vm2 = vcmask 31744   ;;  %v74_v2 = vld [vmem:[#allocation7] sm:$0xf]  ;;  %v73_v3 = vld [vmem:[%s610_s1] sm:$0xff]  ;;  %v71_v4 = vld [vmem:[#allocation5] sm:$0xff]  ;;  %vm489_vm3 = vmmov 1   ;;  %v337_v30 = vstv %s617_s8 }
  0x37   :  { %392 = vmatprep.subr.bf16.mxu0 %v488_v1  ;;  %385 = vmatprep.mubr.msk.f32.mxu0 %vm487_vm0, %v486_v0  ;;  %vm390_vm4 = vmpackc.low %vm79_vm1, %vm489_vm3  ;;  %v72_v5 = vld [vmem:[#allocation5 + $0x8] sm:$0xf]  ;;  %v70_v7 = vld [vmem:[#allocation3] sm:$0xff]  ;;  %vm153_vm5 = vcmask 97280   ;;  %vm250_vm6 = vcmask 261120   ;;  %vm339_vm7 = vcmask 7168  }
  0x38   :  { %366 = vmatpush3.msk.msra.mxu1 %vm79_vm1, %v74_v2  ;;  %v389_v6 = vpack.c.bf16 %v72_v5, %v71_v4  ;;  %v239_v8 = vld [vmem:[%s614_s5] sm:$0xff]  ;;  %v240_v9 = vld [vmem:[%s614_s5 + $0x8] sm:$0xff]  ;;  %v241_v10 = vld [vmem:[%s614_s5 + $0x10] sm:$0xff] }
  0x39   :  { %368 = vmatmul.mubr.msk.f32.vlgmr.msra.gmra.mrb[0].mxu1 %vm75_vm2, %v73_v3  ;;  %388 = vmatprep.subr.bf16.mxu1 %v488_v1  ;;  %v393_v11 = vpack.c.bf16 %v240_v9, %v239_v8  ;;  %v242_v12 = vld [vmem:[%s614_s5 + $0x18] sm:$0xff]  ;;  %v351_v17 = vld [vmem:[%s613_s4] ss:$0 sm:$0xff] }
  0x3a   :  { %374 = vmatprep.mubr.msk.f32.mxu1 %vm487_vm0, %v486_v0  ;;  %391 = vmatpush3.bf16.msk.msra.mxu1 %vm390_vm4, %v389_v6  ;;  %v396_v13 = vpack.c.bf16 %v242_v12, %v241_v10  ;;  %v352_v22 = vld [vmem:[%s615_s6] ss:$0 sm:$0xff] }
  0x3b   :  { %394 = vmatpush3.bf16.msra.mxu0 %v393_v11  ;;  %v354_v26 = vld [vmem:[%s616_s7] ss:$0 sm:$0xff] }
  0x3c   :  { %395 = vmatprep.subr.bf16.mxu0 %v488_v1 }
  0x3d   :  { %375 = vmatmul.mubr.msk.f32.vlgmr.msra.gmra.mrb[2].mxu1 %vm153_vm5, %v70_v7 }
  0x3f   :  { %397 = vmatpush3.bf16.msra.mxu0 %v396_v13 }
 0x10c   :  { %v149_v14 = vpop.f32.mrb[0].mxu1 }
 0x10d   :  { %v369_v15 = vpop.f32.mrb[1].mxu1 }
 0x110   :  { %v226_v16 = vpop.f32.mrb[2].mxu1 }
 0x111   :  { %v227_v18 = vadd.f32 %v226_v16, %v149_v14  ;;  %v376_v19 = vpop.f32.mrb[3].mxu1 }
 0x113   :  { %v237_v20 = vadd.f32 %v351_v17, %v227_v18 }
 0x115   :  { %407 = vtanh.f32 %v237_v20 }
 0x11f   :  { %v408_v21 = vpop.eup %407 }
 0x120   :  { %386 = vmatmul.mubr.msk.f32.vlgmr.msra.gmra.mrb[0].mxu0 %vm250_vm6, %v408_v21 }
 0x1f3   :  { %v320_v23 = vpop.f32.mrb[0].mxu0 }
 0x1f4   :  { %v321_v24 = vadd.f32 %v352_v22, %v320_v23  ;;  %v387_v25 = vpop.f32.mrb[1].mxu0 }
 0x1f6   :  { %409 = vtanh.f32 %v321_v24 }
 0x200   :  { %v410_v27 = vpop.eup %409 }
 0x201   :  { %v332_v28 = vmul.f32 %v410_v27, %v354_v26 }
 0x203   :  { %v333_v29 = vsel %vm250_vm6, %v332_v28, 0.0 }
 0x204   :  { %334 = vadd.xlane.f32.xlu0 %v333_v29 }
 0x291   :  { %v335_v31 = vpop.xlane.xlu0 %334 }
 0x292   :  { %v338_v32 = vadd.f32 %v337_v30, %v335_v31 }
 0x294   :  { %340 = vst.msk [vmem:[%s618_s9] sm:$0xff] %vm339_vm7, %v338_v32 }
 0x295   :  { %345 = vsyncpa [#allocation4], 1 }
 0x296   :  { %346 = vsyncpa [#allocation6], 1 }

</bundles_post_ra>
